<compile_context>
chip_gen: v5e
topology: v5e:2x2
jax: 0.10.0
libtpu: 0.0.40
codegen_flags: <defaults>
</compile_context>

<pallas_src>
from functools import partial

import jax
import jax.numpy as jnp
from jax.experimental import pallas as pl
from jax.experimental.pallas import tpu as pltpu

Z_DIM = 5
HEAD_DIMS = (3, 6, 40, 32, 32)           # shape, scale, orient, pos_x, pos_y
TOTAL_OUT = sum(HEAD_DIMS)               # 113
N_PAD = 128                              # lane-dense padded output width
TB_MIN = 512                             # min batch tile (amortize step overhead)
TB_MAX = 4096                            # max batch tile (multiple of 8)


def _round_up(x, m):
    return ((x + m - 1) // m) * m


def _choose_tile(batch):
    """Pick the batch tile: >=TB_MIN rows, ~8 grid steps, multiple of 8."""
    b8 = _round_up(max(batch, 1), 8)
    if b8 <= TB_MIN:
        return b8                       # single small block (forced-pallas tiny B)
    target = _round_up(pl.cdiv(b8, 8), 8)   # ~B/8 -> >=4 steps per TC on v7x
    return max(TB_MIN, min(target, TB_MAX))


def _heads_kernel(z_ref, w_ref, b_ref, o_ref):
    # z_ref: (tb, Z_DIM), w_ref: (Z_DIM, N_PAD), b_ref: (1, N_PAD), o_ref: (tb, N_PAD)
    acc = jnp.dot(z_ref[...], w_ref[...], preferred_element_type=jnp.float32)  # MXU
    o_ref[...] = (acc + b_ref[...]).astype(o_ref.dtype)


def _pallas_fused_forward(z, w_cat_pad, b_cat_pad):
    """z: (B, Z_DIM) -> fused padded output (B, N_PAD) via a gridded Pallas kernel."""
    B = z.shape[0]
    tb = _choose_tile(B)
    grid = (pl.cdiv(B, tb),)            # ragged last block handled by Pallas

    itemsize = 4  # float32
    flops = 2 * B * Z_DIM * N_PAD
    bytes_accessed = (B * Z_DIM + Z_DIM * N_PAD + N_PAD + B * N_PAD) * itemsize

    return pl.pallas_call(
        _heads_kernel,
        out_shape=jax.ShapeDtypeStruct((B, N_PAD), z.dtype),
        grid=grid,
        in_specs=[
            pl.BlockSpec((tb, Z_DIM), lambda i: (i, 0)),
            pl.BlockSpec((Z_DIM, N_PAD), lambda i: (0, 0)),
            pl.BlockSpec((1, N_PAD), lambda i: (0, 0)),
        ],
        out_specs=pl.BlockSpec((tb, N_PAD), lambda i: (i, 0)),
        compiler_params=pltpu.CompilerParams(
            dimension_semantics=("parallel",),   # shard batch tiles across TCs (v7x)
            vmem_limit_bytes=32 * 1024 * 1024,   # keep v7x (64 MiB physical) safe
        ),
        cost_estimate=pl.CostEstimate(
            flops=flops, transcendentals=0, bytes_accessed=bytes_accessed),
    )(z, w_cat_pad, b_cat_pad)


@partial(jax.jit, static_argnames=("use_pallas",))
def latent_classifier_forward(z, w_cat_pad, b_cat_pad, *, use_pallas=None):
    """z: (B, Z_DIM) f32 -> list of 5 arrays: (B,3),(B,6),(B,40),(B,32),(B,32)."""
    B = z.shape[0]
    if use_pallas is None:
        # Below ~1K rows the whole problem is <1 MiB; XLA's fused matmul+add
        # beats pallas_call launch overhead.
        use_pallas = B >= 1024

    if use_pallas:
        out = _pallas_fused_forward(z, w_cat_pad, b_cat_pad)
    else:
        out = z @ w_cat_pad + b_cat_pad

    # Under jit these lane slices fuse with the consumer / collapse to one copy.
    heads = []
    off = 0
    for d in HEAD_DIMS:
        heads.append(out[:, off:off + d])
        off += d
    return heads


def init_params(key):
    """Deterministic init mimicking PyTorch nn.Linear default (uniform +-1/sqrt(fan_in)).

    Returns the fused + lane-padded parameters: w (Z_DIM, 128), b (1, 128).
    Lanes [113:128] are zero and never read back.
    """
    ws, bs = [], []
    k = 1.0 / jnp.sqrt(jnp.float32(Z_DIM))
    for d in HEAD_DIMS:
        key, kw, kb = jax.random.split(key, 3)
        # PyTorch stores weight as (out_features, in_features); transpose to (in, out).
        w = jax.random.uniform(kw, (d, Z_DIM), jnp.float32, minval=-k, maxval=k).T
        b = jax.random.uniform(kb, (d,), jnp.float32, minval=-k, maxval=k)
        ws.append(w)
        bs.append(b)
    w_cat = jnp.concatenate(ws, axis=1)                        # (Z_DIM, 113)
    b_cat = jnp.concatenate(bs, axis=0)[None, :]               # (1, 113)
    w_pad = jnp.pad(w_cat, ((0, 0), (0, N_PAD - TOTAL_OUT)))   # (Z_DIM, 128)
    b_pad = jnp.pad(b_cat, ((0, 0), (0, N_PAD - TOTAL_OUT)))   # (1, 128)
    return w_pad, b_pad


def _check(heads, z, w_pad, b_pad):
    ref_full = z @ w_pad + b_pad
    off = 0
    ok = True
    for h, d in zip(heads, HEAD_DIMS):
        ok &= (h.shape == (z.shape[0], d))
        ok &= bool(jnp.allclose(h, ref_full[:, off:off + d], atol=1e-5, rtol=1e-5))
        off += d
    return ok


if __name__ == "__main__":
    key = jax.random.PRNGKey(0)
    key, kz_small, kz_ragged, kz_large, kp = jax.random.split(key, 5)

    w_pad, b_pad = init_params(kp)

    # Small batch (module-scale shapes) — force the Pallas path so the kernel runs.
    B_small = 8
    z_small = jax.random.normal(kz_small, (B_small, Z_DIM), jnp.float32)
    heads_small = latent_classifier_forward(z_small, w_pad, b_pad, use_pallas=True)
    heads_small = [jax.block_until_ready(h) for h in heads_small]

    # Ragged batch — exercises the un-padded grid with a partial last block.
    B_ragged = 1000
    z_ragged = jax.random.normal(kz_ragged, (B_ragged, Z_DIM), jnp.float32)
    heads_ragged = latent_classifier_forward(z_ragged, w_pad, b_pad, use_pallas=True)
    heads_ragged = [jax.block_until_ready(h) for h in heads_ragged]

    # Larger batch — default dispatch (>=1024 rows -> Pallas), multi-step grid.
    B_large = 4096
    z_large = jax.random.normal(kz_large, (B_large, Z_DIM), jnp.float32)
    heads_large = latent_classifier_forward(z_large, w_pad, b_pad)
    heads_large = [jax.block_until_ready(h) for h in heads_large]

    ok = _check(heads_small, z_small, w_pad, b_pad)
    ok &= _check(heads_ragged, z_ragged, w_pad, b_pad)
    ok &= _check(heads_large, z_large, w_pad, b_pad)

    if ok:
        print("KERNEL_OK")
    else:
        print("KERNEL_MISMATCH")
</pallas_src>

<mosaic_0001>
module attributes {stable_mosaic.version = 11 : i64} {
  func.func @_heads_kernel(%arg0: i32, %arg1: memref<8x5xf32, #tpu.memory_space<vmem>>, %arg2: memref<5x128xf32, #tpu.memory_space<vmem>>, %arg3: memref<1x128xf32, #tpu.memory_space<vmem>>, %arg4: memref<8x128xf32, #tpu.memory_space<vmem>>) attributes {dimension_semantics = [#tpu.dimension_semantics<parallel>], iteration_bounds = array<i64: 1>, scalar_prefetch = 0 : i64, scratch_operands = 0 : i64, tpu.core_type = #tpu.core_type<tc>, window_params = [{transform_indices = @transform_0, window_bounds = array<i64: 8, 5>}, {pipeline_mode = #tpu.pipeline_mode<synchronous>, transform_indices = @transform_1, window_bounds = array<i64: 5, 128>}, {pipeline_mode = #tpu.pipeline_mode<synchronous>, transform_indices = @transform_2, window_bounds = array<i64: 1, 128>}, {transform_indices = @transform_3, window_bounds = array<i64: 8, 128>}]} {
    %c0 = arith.constant 0 : index
    %c0_0 = arith.constant 0 : index
    %0 = vector.load %arg1[%c0, %c0_0] : memref<8x5xf32, #tpu.memory_space<vmem>>, vector<8x5xf32>
    %c0_1 = arith.constant 0 : index
    %c0_2 = arith.constant 0 : index
    %1 = vector.load %arg2[%c0_1, %c0_2] : memref<5x128xf32, #tpu.memory_space<vmem>>, vector<5x128xf32>
    %cst = arith.constant dense<0.000000e+00> : vector<8x128xf32>
    %2 = tpu.matmul %0, %1, %cst {dimension_numbers = #tpu.dot_dimension_numbers<[1], [0], [0], [1], [0, 0, 1, 1], [], []>} : vector<8x5xf32>, vector<5x128xf32>, vector<8x128xf32> -> vector<8x128xf32>
    %c0_3 = arith.constant 0 : index
    %c0_4 = arith.constant 0 : index
    %3 = vector.load %arg3[%c0_3, %c0_4] : memref<1x128xf32, #tpu.memory_space<vmem>>, vector<1x128xf32>
    %4 = vector.broadcast %3 : vector<1x128xf32> to vector<8x128xf32>
    %5 = arith.addf %2, %4 : vector<8x128xf32>
    %c0_5 = arith.constant 0 : index
    %c0_6 = arith.constant 0 : index
    %6 = vector.load %arg4[%c0_5, %c0_6] : memref<8x128xf32, #tpu.memory_space<vmem>>, vector<8x128xf32>
    tpu.vector_store %arg4[%c0_5, %c0_6], %5 {strides = array<i32>} : memref<8x128xf32, #tpu.memory_space<vmem>>, vector<8x128xf32>,
    return
  }
  func.func @transform_0(%arg0: i32) -> (i32, i32) {
    %c0_i32 = arith.constant 0 : i32
    %c0_i32_0 = arith.constant 0 : i32
    return %arg0, %c0_i32 : i32, i32
  }
  func.func @transform_1(%arg0: i32) -> (i32, i32) {
    %c0_i32 = arith.constant 0 : i32
    %c0_i32_0 = arith.constant 0 : i32
    %c0_i32_1 = arith.constant 0 : i32
    return %c0_i32, %c0_i32_0 : i32, i32
  }
  func.func @transform_2(%arg0: i32) -> (i32, i32) {
    %c0_i32 = arith.constant 0 : i32
    %c0_i32_0 = arith.constant 0 : i32
    %c0_i32_1 = arith.constant 0 : i32
    return %c0_i32, %c0_i32_0 : i32, i32
  }
  func.func @transform_3(%arg0: i32) -> (i32, i32) {
    %c0_i32 = arith.constant 0 : i32
    %c0_i32_0 = arith.constant 0 : i32
    return %arg0, %c0_i32 : i32, i32
  }
}

</mosaic_0001>

<bundles_post_ra>
// kernel: latent_classifier_forward.1
= control target key start
LH: loop header
LB: loop body
LE: loop exit
PB: predicated region body
PF: predicated region fallthrough
CT: control target
= control target key end

     0   :  { %8 = vsyncpa [#allocation3], 0  ;;  %s174_s0 = inlined_call_operand.hbm [shape: f32[8,5], index: 0, kind: input, shape index: {}]   ;;  %s175_s1 = inlined_call_operand.hbm [shape: f32[5,128], index: 1, kind: input, shape index: {}]   ;;  %s176_s2 = inlined_call_operand.vmem [shape: f32[1,128], index: 2, kind: input, shape index: {}]   ;;  %s177_s3 = inlined_call_operand.vmem [shape: f32[8,128], index: 3, kind: output, shape index: {}]  }
   0x1   :  { %s15_s14 = sshll.u32 %s174_s0, 4  ;;  %s16_s14 = int_to_ptr.hbm [resolvable:$true] %s15_s14 }
   0x2   :  { %9 = vsyncpa [#allocation5], 0  ;;  %s140_s15 = smov [#allocation2]   ;;  %s26_s19 = sshll.u32 %s175_s1, 4  ;;  %s27_s19 = int_to_ptr.hbm [resolvable:$true] %s26_s19 }
   0x3   :  { %s17_s16 = sshll.u32 %s140_s15, 4  ;;  %s141_s20 = smov [#allocation4]   ;;  %s18_s16 = int_to_ptr.vmem [resolvable:$true] %s17_s16 }
   0x4   :  { %20 = dma.hbm_to_vmem [thread:$0]  %s16_s14, 128, %s18_s16, [#allocation3]  }
   0x5   :  { %s28_s21 = sshll.u32 %s141_s20, 4  ;;  %s29_s21 = int_to_ptr.vmem [resolvable:$true] %s28_s21 }
   0x6   :  { %31 = dma.hbm_to_vmem [thread:$0]  %s27_s19, 128, %s29_s21, [#allocation5]  }
   0x7   :  { %136 = dma.done.wait [#allocation3], 128  }
   0x8   :  { %137 = vsyncadd [#allocation3], 4294967168 }
   0x9   :  { %138 = dma.done.wait [#allocation5], 128  }
   0xa   :  { %139 = vsyncadd [#allocation5], 4294967168  ;;  %vm52_vm0 = vcmask 1044480   ;;  %vm48_vm1 = vcmask 39936   ;;  %v43_v0 = vld [vmem:[#allocation4] sm:$0x1f] }
   0xb   :  { %v42_v1 = vld [vmem:[#allocation2] sm:$0xff]  ;;  %83 = vmatpush.msk.msra.mxu0 %vm52_vm0, %v43_v0  ;;  %v87_v2 = vld [vmem:[%s176_s2] ss:$0 sm:$0xff] }
   0xc   :  { %84 = vmatmul.msk.f32.vlgmr.msra.gmra.mxu0 %vm48_vm1, %v42_v1 }
  0x89   :  { %v73_v3 = vpop.f32.mrf.mxu0 }
  0x8a   :  { %v74_v4 = vadd.f32 %v87_v2, %v73_v3 }
  0x8c   :  { %76 = vst [vmem:[%s177_s3] sm:$0xff] %v74_v4 }
  0x8d   :  { %81 = vsyncpa [#allocation3], 1 }
  0x8e   :  { %82 = vsyncpa [#allocation5], 1 }

</bundles_post_ra>
